<compile_context>
chip_gen: v7x
topology: tpu7x:2x2x1
jax: 0.10.0
libtpu: 0.0.40
codegen_flags: <defaults>
</compile_context>

<pallas_src>
import jax
import jax.numpy as jnp
from jax.experimental import pallas as pl
from jax.experimental.pallas import tpu as pltpu


_LANES = 128
_SUBLANES = 8


def _softplus(x):
    # Numerically stable softplus, matches torch.nn.Softplus() (beta=1).
    return jnp.maximum(x, 0.0) + jnp.log1p(jnp.exp(-jnp.abs(x)))


def treat_rule_kernel(sb_ref, x_ref, out_ref):
    """One row tile.

    sb_ref : SMEM (2,) f32 = (0.5 * softplus(alpha), beta)  [precomputed]
    x_ref  : VMEM (tb, L)  input tile
    out_ref: VMEM (tb, 2L) fused output tile; [:, :L] = 1 - pred, [:, L:] = pred
    """
    x = x_ref[...]
    # sigmoid(z) = 0.5 * (1 + tanh(z / 2)); one EUP op per element.
    t = jnp.tanh(sb_ref[0] * (x - sb_ref[1]))
    c = out_ref.shape[-1] // 2
    out_ref[:, :c] = 0.5 - 0.5 * t   # zero_pred
    out_ref[:, c:] = 0.5 + 0.5 * t   # pred


def _pick_row_tile(rows, lanes_in, lanes_out, row_tile):
    """Largest row tile (multiple of 8, or == rows) whose double-buffered
    in+out blocks stay inside a v7x-safe VMEM budget."""
    bytes_per_row = 4 * (lanes_in + lanes_out)
    budget = 24 << 20  # double-buffered in+out blocks <= 24 MiB (v7x-safe)
    tb = min(rows, row_tile)
    if tb != rows:
        tb = max(_SUBLANES, (tb // _SUBLANES) * _SUBLANES)
    while tb > _SUBLANES and 2 * tb * bytes_per_row > budget:
        tb = max(_SUBLANES, ((tb // 2) // _SUBLANES) * _SUBLANES)
    return tb


def treat_rule_forward(treatment_effect, alpha, beta, *, row_tile=2048):
    """Pallas TreatRule forward.

    treatment_effect: (B, T, C).  Returns (B, T, 2*C) with
      [..., :C] = 1 - sigmoid(softplus(alpha) * (x - beta))
      [..., C:] =     sigmoid(softplus(alpha) * (x - beta))
    """
    assert treatment_effect.ndim == 3, "expects (batch, time, channels)"
    alpha = jnp.asarray(alpha, jnp.float32)
    beta = jnp.asarray(beta, jnp.float32)
    # The torch module's parameters are scalars (shape (1,)); per-channel
    # parameters are NOT supported by this packing.
    assert alpha.size == 1 and beta.size == 1, "TreatRule uses scalar alpha/beta"

    B, T, C = treatment_effect.shape
    x = treatment_effect.astype(jnp.float32)

    # Hoisted parameter math: one softplus total, packed for SMEM.
    half_scale = 0.5 * _softplus(jnp.reshape(alpha, ()))
    sb = jnp.stack([half_scale, jnp.reshape(beta, ())]).astype(jnp.float32)

    if C % _LANES == 0:
        # Lane-dense direct layout: kernel writes the final (B*T, 2C) layout,
        # no padding, no post-kernel concatenate.
        rows, lanes_in = B * T, C
        x2d = x.reshape(rows, lanes_in)
        slabbed = False
    else:
        # Lane-dense slab: flatten to (rows, 128); fused (rows, 256) output
        # (zero in lanes 0..127, pred in 128..255).
        n = x.size
        pad = (-n) % _LANES
        flat = x.reshape(-1)
        if pad:
            # TODO(synk): a dedicated ragged-tail path would avoid this copy;
            # it only triggers when B*T*C is not a multiple of 128.
            flat = jnp.pad(flat, (0, pad))
        lanes_in = _LANES
        rows = (n + pad) // _LANES
        x2d = flat.reshape(rows, lanes_in)
        slabbed = True

    lanes_out = 2 * lanes_in
    tb = _pick_row_tile(rows, lanes_in, lanes_out, row_tile)
    grid = (pl.cdiv(rows, tb),)
    n_proc = rows * lanes_in
    block_bytes = 4 * tb * (lanes_in + lanes_out)
    vmem_limit = int(min(max(2 * block_bytes + (4 << 20), 16 << 20), 48 << 20))

    out2d = pl.pallas_call(
        treat_rule_kernel,
        out_shape=jax.ShapeDtypeStruct((rows, lanes_out), jnp.float32),
        grid=grid,
        in_specs=[
            pl.BlockSpec(memory_space=pltpu.MemorySpace.SMEM),  # (half_scale, beta)
            pl.BlockSpec((tb, lanes_in), lambda i: (i, 0)),     # x tile
        ],
        out_specs=pl.BlockSpec((tb, lanes_out), lambda i: (i, 0)),
        compiler_params=pltpu.CompilerParams(
            dimension_semantics=("parallel",),
            vmem_limit_bytes=vmem_limit),
        cost_estimate=pl.CostEstimate(
            flops=6 * n_proc,
            transcendentals=n_proc,
            bytes_accessed=12 * n_proc + 8),
    )(sb, x2d)

    if not slabbed:
        return out2d.reshape(B, T, lanes_out)

    n = B * T * C
    zero = out2d[:, :_LANES].reshape(-1)[:n].reshape(B, T, C)
    pred = out2d[:, _LANES:].reshape(-1)[:n].reshape(B, T, C)
    return jnp.concatenate([zero, pred], axis=2)


def reference_forward(treatment_effect, alpha, beta):
    """Plain-JAX reference of TreatRule.forward, for validation."""
    x = treatment_effect.astype(jnp.float32)
    scale = _softplus(jnp.asarray(alpha, jnp.float32))
    logit = scale * (x - jnp.asarray(beta, jnp.float32))
    pred = 1.0 / (1.0 + jnp.exp(-logit))
    return jnp.concatenate([1.0 - pred, pred], axis=2)


if __name__ == "__main__":
    key = jax.random.PRNGKey(0)

    # Module parameters: alpha = ones(1), beta = zeros(1) (float64 in torch).
    alpha = jnp.ones((1,), jnp.float32)
    beta = jnp.zeros((1,), jnp.float32)

    # Small shapes exercising: slab path with ragged tail (C=1), slab path with
    # exact 128-multiple length (no pad), and the direct C%128==0 layout path.
    shapes = [(8, 16, 1), (4, 16, 8), (2, 8, 128)]
    for i, (B, T, C) in enumerate(shapes):
        k = jax.random.fold_in(key, i)
        treatment_effect = jax.random.normal(k, (B, T, C), jnp.float32)

        out = treat_rule_forward(treatment_effect, alpha, beta)
        out = jax.block_until_ready(out)

        ref = reference_forward(treatment_effect, alpha, beta)
        assert out.shape == (B, T, 2 * C), (out.shape, (B, T, 2 * C))
        assert jnp.allclose(out, ref, atol=1e-5, rtol=1e-5), (
            f"mismatch vs reference at shape {(B, T, C)}")

    print("KERNEL_OK")
</pallas_src>

<mosaic_0001>
module attributes {stable_mosaic.version = 11 : i64} {
  func.func @treat_rule_kernel(%arg0: i32, %arg1: memref<2xf32, #tpu.memory_space<smem>>, %arg2: memref<1x128xf32, #tpu.memory_space<vmem>>, %arg3: memref<1x256xf32, #tpu.memory_space<vmem>>) attributes {dimension_semantics = [#tpu.dimension_semantics<parallel>], iteration_bounds = array<i64: 1>, scalar_prefetch = 0 : i64, scratch_operands = 0 : i64, tpu.core_type = #tpu.core_type<tc>, window_params = [{transform_indices = @transform_0, window_bounds = array<i64: 2>}, {transform_indices = @transform_1, window_bounds = array<i64: 1, 128>}, {transform_indices = @transform_2, window_bounds = array<i64: 1, 256>}]} {
    %c0 = arith.constant 0 : index
    %c0_0 = arith.constant 0 : index
    %0 = vector.load %arg2[%c0, %c0_0] : memref<1x128xf32, #tpu.memory_space<vmem>>, vector<1x128xf32>
    %c0_1 = arith.constant 0 : index
    %1 = memref.load %arg1[%c0_1] : memref<2xf32, #tpu.memory_space<smem>>
    %c1 = arith.constant 1 : index
    %2 = memref.load %arg1[%c1] : memref<2xf32, #tpu.memory_space<smem>>
    %3 = vector.broadcast %2 : f32 to vector<1x128xf32>
    %4 = arith.subf %0, %3 : vector<1x128xf32>
    %5 = vector.broadcast %1 : f32 to vector<1x128xf32>
    %6 = arith.mulf %5, %4 : vector<1x128xf32>
    %7 = math.tanh %6 : vector<1x128xf32>
    %cst = arith.constant 5.000000e-01 : f32
    %8 = vector.broadcast %cst : f32 to vector<1x128xf32>
    %9 = arith.mulf %8, %7 : vector<1x128xf32>
    %cst_2 = arith.constant 5.000000e-01 : f32
    %10 = vector.broadcast %cst_2 : f32 to vector<1x128xf32>
    %11 = arith.subf %10, %9 : vector<1x128xf32>
    %c0_3 = arith.constant 0 : index
    %c0_4 = arith.constant 0 : index
    %12 = vector.load %arg3[%c0_3, %c0_4] : memref<1x256xf32, #tpu.memory_space<vmem>>, vector<1x128xf32>
    tpu.vector_store %arg3[%c0_3, %c0_4], %11 {strides = array<i32>} : memref<1x256xf32, #tpu.memory_space<vmem>>, vector<1x128xf32>,
    %cst_5 = arith.constant 5.000000e-01 : f32
    %13 = vector.broadcast %cst_5 : f32 to vector<1x128xf32>
    %14 = arith.mulf %13, %7 : vector<1x128xf32>
    %cst_6 = arith.constant 5.000000e-01 : f32
    %15 = vector.broadcast %cst_6 : f32 to vector<1x128xf32>
    %16 = arith.addf %15, %14 : vector<1x128xf32>
    %c0_7 = arith.constant 0 : index
    %c128 = arith.constant 128 : index
    %17 = vector.load %arg3[%c0_7, %c128] : memref<1x256xf32, #tpu.memory_space<vmem>>, vector<1x128xf32>
    tpu.vector_store %arg3[%c0_7, %c128], %16 {strides = array<i32>} : memref<1x256xf32, #tpu.memory_space<vmem>>, vector<1x128xf32>,
    return
  }
  func.func @transform_0(%arg0: i32) -> i32 {
    %c0_i32 = arith.constant 0 : i32
    %c0_i32_0 = arith.constant 0 : i32
    return %c0_i32 : i32
  }
  func.func @transform_1(%arg0: i32) -> (i32, i32) {
    %c0_i32 = arith.constant 0 : i32
    %c0_i32_0 = arith.constant 0 : i32
    return %arg0, %c0_i32 : i32, i32
  }
  func.func @transform_2(%arg0: i32) -> (i32, i32) {
    %c0_i32 = arith.constant 0 : i32
    %c0_i32_0 = arith.constant 0 : i32
    return %arg0, %c0_i32 : i32, i32
  }
}

</mosaic_0001>

<bundles_post_ra>
// kernel: tpu_custom_call.1
= control target key start
LH: loop header
LB: loop body
LE: loop exit
PB: predicated region body
PF: predicated region fallthrough
CT: control target
= control target key end

     0   :  { %7 = vsyncpa [#allocation4], 0  ;;  %s140_s0 = inlined_call_operand.hbm [shape: f32[2], index: 0, kind: input, shape index: {}]   ;;  %s141_s1 = inlined_call_operand.vmem [shape: f32[1,128], index: 1, kind: input, shape index: {}]   ;;  %s142_s2 = inlined_call_operand.hbm [shape: f32[1,256], index: 2, kind: output, shape index: {}]  }
   0x1   :  { %8 = vsyncpa [#allocation3], 0  ;;  %s60_s11 = scalar_lea.hbm %s140_s0, 16 }
   0x2   :  { %p61_p0 = scmp.ne.s32.totalorder %s140_s0, %s60_s11  ;;  %p64_p1 = scmp.lt.u32.totalorder %s60_s11, %s140_s0 }
   0x4   :  { %p66_p2 = pnand %p64_p1, %p61_p0 }
   0x6   :  { %69 = shalt.err (!%p66_p2)
}
   0x7   :  { %s96_s16 = smov [#allocation2]  }
   0x8   :  { %16 = dma.hbm_to_smem %s140_s0, 16, %s96_s16, [#allocation4]  }
   0x9   :  { %92 = dma.done.wait [#allocation4], 16  }
   0xa   :  { %93 = vsyncadd [#allocation4], 4294967280 }
   0xb   :  { %22 = sfence }
   0xc   :  { %s24_s19 = sld [smem:[#allocation2]]  ;;  %s55_s20 = sld [smem:[#allocation2 + $0x1]]  ;;  %v23_v0 = vld [vmem:[%s141_s1] sm:$0x1]  ;;  %v33_v5 = vlaneseq }
   0xd   :  { %s97_s23 = smov [#allocation5]  }
   0xe   :  { %s46_s24 = sshll.u32 %s97_s23, 4  ;;  %vm35_vm0 = vcmp.lt.s32.totalorder %v33_v5, 128  ;;  %s47_s24 = int_to_ptr.vmem [resolvable:$true] %s46_s24 }
   0xf   :  { %s70_s0 = scalar_lea.vmem %s47_s24, 32  ;;  %p75_p4 = scmp.lt.s32.totalorder %s47_s24, %s47_s24 }
  0x10   :  { %p71_p3 = scmp.ne.s32.totalorder %s47_s24, %s70_s0  ;;  %p76_p5 = scmp.lt.s32.totalorder %s70_s0, %s70_s0 }
  0x12   :  { %v26_v1 = vstv %s55_s20  ;;  %v28_v2 = vstv %s24_s19  ;;  %p77_p6 = por %p76_p5, %p75_p4 }
  0x13   :  { %v27_v3 = vsub.f32 %v23_v0, %v26_v1 }
  0x14   :  { %p78_p7 = pnand %p77_p6, %p71_p3 }
  0x15   :  { %v29_v4 = vmul.f32 %v28_v2, %v27_v3 }
  0x17   :  { %58 = vtanh.f32 %v29_v4 }
  0x21   :  { %v59_v6 = vpop.eup %58 }
  0x22   :  { %v31_v7 = vmul.f32 0.5, %v59_v6 }
  0x24   :  { %v32_v8 = vsub.f32 0.5, %v31_v7  ;;  %v38_v9 = vadd.f32 0.5, %v31_v7 }
  0x26   :  { %37 = vst.msk [vmem:[#allocation5] sm:$0x1] %vm35_vm0, %v32_v8  ;;  %39 = vst.msk [vmem:[#allocation5 + $0x1] sm:$0x1] %vm35_vm0, %v38_v9 }
  0x27   :  { %81 = shalt.err (!%p78_p7)
}
  0x28   :  { %s82_s26 = scalar_lea.hbm %s142_s2, 32 }
  0x29   :  { %p83_p8 = scmp.ne.s32.totalorder %s142_s2, %s82_s26  ;;  %p86_p9 = scmp.lt.u32.totalorder %s82_s26, %s142_s2 }
  0x2b   :  { %p88_p10 = pnand %p86_p9, %p83_p8 }
  0x2d   :  { %91 = shalt.err (!%p88_p10)
}
  0x2e   :  { %49 = dma.vmem_to_hbm [thread:$0]  %s47_s24, 32, %s142_s2, [#allocation3]  }
  0x2f   :  { %94 = dma.done.wait [#allocation3], 32  }
  0x30   :  { %95 = vsyncadd [#allocation3], 4294967264 }
  0x31   :  { %53 = vsyncpa [#allocation3], 1 }
  0x32   :  { %54 = vsyncpa [#allocation4], 1 }

</bundles_post_ra>
